<compile_context>
chip_gen: v5e
topology: v5e:2x2
jax: 0.10.0
libtpu: 0.0.40
codegen_flags: <defaults>
</compile_context>

<pallas_src>
import functools

import jax
import jax.numpy as jnp
from jax.experimental import pallas as pl
from jax.experimental.pallas import tpu as pltpu

BN_EPS = 1e-5


def down_kernel(xk_ref, g1_ref, t1_ref, ga1_ref, be1_ref,
                g2_ref, t2_ref, ga2_ref, be2_ref,
                o_ref, pad2_ref, *, B, Hp, Wp, Cin, Cmid, Cout):
    f32 = jnp.float32
    M = B * Hp
    L1 = (Wp + 2) * Cin
    L2 = (Wp + 2) * Cmid

    # ---- zero ONLY the pad border of the stage-2 scratch, ONCE --------------------
    zrow = jnp.zeros((B, 1, L2), f32)
    pad2_ref[:, pl.ds(0, 1), :] = zrow                                   # top pad row
    pad2_ref[:, pl.ds(Hp + 1, 1), :] = zrow                              # bottom pad row
    pad2_ref[:, :, pl.ds(Wp * Cmid, 2 * Cmid)] = jnp.zeros((B, Hp + 2, 2 * Cmid), f32)

    # ---- MaxPool2d(2): elementwise max of the four pre-split 2x2 phases -----------
    # xk_ref is (4, B, Hp+2, (Wp+2)*Cin); the wrapper pre-padded spatially by 2, so the
    # pooled result is already the zero-padded conv-1 operand (border = max(0,0,0,0)=0).
    pooled = jnp.maximum(jnp.maximum(xk_ref[0], xk_ref[1]),
                         jnp.maximum(xk_ref[2], xk_ref[3]))              # (B, Hp+2, L1)

    ones_m = jnp.ones((1, M), f32)

    def bn_relu(y, t_ref, ga_ref, be_ref):
        # Training-mode BatchNorm folded to per-channel scale/shift.  Row-sums go through
        # the MXU; the (N, N) collapse matrix both reduces over the Wp lane groups and
        # re-broadcasts per-channel stats back to the (w, c)-tiled lane layout.
        s1 = jnp.dot(ones_m, y, preferred_element_type=f32)              # (1, Wp*Co)
        s2 = jnp.dot(ones_m, y * y, preferred_element_type=f32)
        mu = jnp.dot(s1, t_ref[...], preferred_element_type=f32)         # per-channel mean
        ex2 = jnp.dot(s2, t_ref[...], preferred_element_type=f32)        # per-channel E[y^2]
        var = jnp.maximum(ex2 - mu * mu, 0.0)                            # guard cancellation
        scale = ga_ref[...] * jax.lax.rsqrt(var + BN_EPS)
        shift = be_ref[...] - mu * scale
        return jnp.maximum(y * scale + shift, 0.0)                       # ReLU

    # ---- Conv1 (3x3, pad=1) as 3 accumulating banded matmuls ----------------------
    y1 = jnp.dot(pooled[:, 0:Hp, :].reshape(M, L1), g1_ref[0],
                 preferred_element_type=f32)
    for dy in (1, 2):
        s = pooled[:, dy:dy + Hp, :].reshape(M, L1)
        y1 = y1 + jnp.dot(s, g1_ref[dy], preferred_element_type=f32)
    h1 = bn_relu(y1, t1_ref, ga1_ref, be1_ref)                           # (M, Wp*Cmid)

    # stage-1 -> stage-2 handoff: ONE lane-aligned store into the padded interior.
    pad2_ref[:, pl.ds(1, Hp), pl.ds(0, Wp * Cmid)] = h1.reshape(B, Hp, Wp * Cmid)

    # ---- Conv2 (3x3, pad=1), same banded-matmul structure --------------------------
    y2 = jnp.dot(pad2_ref[:, pl.ds(0, Hp), :].reshape(M, L2), g2_ref[0],
                 preferred_element_type=f32)
    for dy in (1, 2):
        s = pad2_ref[:, pl.ds(dy, Hp), :].reshape(M, L2)
        y2 = y2 + jnp.dot(s, g2_ref[dy], preferred_element_type=f32)
    o_ref[...] = bn_relu(y2, t2_ref, ga2_ref, be2_ref).astype(o_ref.dtype)


def _banded_conv_weights(w_oihw, Wp, col_order):
    """PyTorch (Co,Ci,3,3) -> (3, (Wp+2)*Ci, Wp*Co) banded matrices, one per dy.

    G[dy, q*Ci+ci, w*Co+co] = weight[co, ci, dy, j-w] if 0<=j-w<=2 else 0,
    where j = col_order[q] is the logical padded column held at physical block q.
    """
    Co, Ci = w_oihw.shape[0], w_oihw.shape[1]
    w_hwio = jnp.transpose(w_oihw, (2, 3, 1, 0)).astype(jnp.float32)     # (ky,kx,Ci,Co)
    j = jnp.arange(Wp + 2)[:, None]
    w = jnp.arange(Wp)[None, :]
    dx = j - w
    valid = ((dx >= 0) & (dx <= 2)).astype(jnp.float32)                  # (Wp+2, Wp)
    dx_c = jnp.clip(dx, 0, 2)
    blk = w_hwio[:, dx_c] * valid[None, :, :, None, None]                # (3,Wp+2,Wp,Ci,Co)
    blk = blk[:, jnp.array(col_order)]                                   # physical col order
    return jnp.transpose(blk, (0, 1, 3, 2, 4)).reshape(3, (Wp + 2) * Ci, Wp * Co)


def _channel_collapse_matrix(Co, Wp, npix):
    """(Wp*Co, Wp*Co) matrix: sums lanes with equal channel and rebroadcasts, /npix."""
    n = jnp.arange(Wp * Co)
    same = ((n[:, None] % Co) == (n[None, :] % Co)).astype(jnp.float32)
    return same / float(npix)


@jax.jit
def down_forward(x_nchw, w1, b1, g1, be1, w2, b2, g2, be2):
    B, Cin, H, W = x_nchw.shape
    Cmid = w1.shape[0]
    Cout = w2.shape[0]
    Hp, Wp = H // 2, W // 2
    Npix = B * Hp * Wp
    M = B * Hp
    L1 = (Wp + 2) * Cin
    L2 = (Wp + 2) * Cmid

    # Conv biases cancel exactly under training-mode BatchNorm -> never applied.
    del b1, b2

    # Physical padded-column order: [interior w=0..Wp-1 | left pad | right pad], so the
    # stage-1->stage-2 interior store starts at lane 0 and both pad columns are contiguous.
    col_order = list(range(1, Wp + 1)) + [0, Wp + 1]

    # Pooling-ready, spatially pre-padded input: (4, B, Hp+2, (Wp+2)*Cin).
    # (Wrapper-side transposes are layout plumbing and disappear in an NHWC model.)
    x_nhwc = jnp.transpose(x_nchw, (0, 2, 3, 1))
    x_pad = jnp.pad(x_nhwc, ((0, 0), (2, 2), (2, 2), (0, 0)))
    x6 = x_pad.reshape(B, Hp + 2, 2, Wp + 2, 2, Cin)
    x6 = jnp.transpose(x6, (2, 4, 0, 1, 3, 5))                            # (2,2,B,Hp+2,Wp+2,Cin)
    x6 = x6[:, :, :, :, jnp.array(col_order), :]
    xk = x6.reshape(4, B, Hp + 2, L1)

    G1 = _banded_conv_weights(w1, Wp, col_order)                          # (3, L1, Wp*Cmid)
    G2 = _banded_conv_weights(w2, Wp, col_order)                          # (3, L2, Wp*Cout)
    T1 = _channel_collapse_matrix(Cmid, Wp, Npix)
    T2 = _channel_collapse_matrix(Cout, Wp, Npix)
    g1t, be1t = jnp.tile(g1, Wp)[None, :], jnp.tile(be1, Wp)[None, :]
    g2t, be2t = jnp.tile(g2, Wp)[None, :], jnp.tile(be2, Wp)[None, :]

    kern = functools.partial(down_kernel, B=B, Hp=Hp, Wp=Wp,
                             Cin=Cin, Cmid=Cmid, Cout=Cout)
    vmem = pl.BlockSpec(memory_space=pltpu.MemorySpace.VMEM)

    # Explicit VMEM budget from actual buffer sizes (f32), with headroom.
    buf_bytes = 4 * (xk.size + G1.size + G2.size + T1.size + T2.size
                     + g1t.size + be1t.size + g2t.size + be2t.size
                     + M * Wp * Cout                # output slab
                     + B * (Hp + 2) * L2)           # stage-2 padded scratch
    vmem_limit = int(2 * buf_bytes) + (8 << 20)

    out2d = pl.pallas_call(
        kern,
        out_shape=jax.ShapeDtypeStruct((M, Wp * Cout), jnp.float32),
        in_specs=[vmem] * 9,
        out_specs=vmem,
        scratch_shapes=[pltpu.VMEM((B, Hp + 2, L2), jnp.float32)],
        compiler_params=pltpu.CompilerParams(vmem_limit_bytes=vmem_limit),
    )(xk, G1, T1, g1t, be1t, G2, T2, g2t, be2t)

    out = out2d.reshape(B, Hp, Wp, Cout)
    return jnp.transpose(out, (0, 3, 1, 2))                               # back to NCHW


def down_reference(x, w1, b1, g1, be1, w2, b2, g2, be2):
    """Pure-JAX NCHW reference matching the PyTorch forward (train-mode BN)."""
    B, C, H, W = x.shape
    xp = x.reshape(B, C, H // 2, 2, W // 2, 2).max(axis=(3, 5))

    def block(y, w, b, g, be):
        y = jax.lax.conv_general_dilated(
            y, w, window_strides=(1, 1), padding=((1, 1), (1, 1)),
            dimension_numbers=("NCHW", "OIHW", "NCHW"),
            precision=jax.lax.Precision.HIGHEST)
        y = y + b[None, :, None, None]
        mu = y.mean(axis=(0, 2, 3), keepdims=True)
        var = ((y - mu) ** 2).mean(axis=(0, 2, 3), keepdims=True)
        y = g[None, :, None, None] * (y - mu) / jnp.sqrt(var + BN_EPS) \
            + be[None, :, None, None]
        return jnp.maximum(y, 0.0)

    y = block(xp, w1, b1, g1, be1)
    y = block(y, w2, b2, g2, be2)
    return y


if __name__ == "__main__":
    B, Cin, H, W = 2, 4, 16, 16
    Cout = 8          # Down(in_channels=4, out_channels=8); mid_channels == out_channels
    Cmid = Cout

    key = jax.random.PRNGKey(0)
    kx, k1, k2, k3, k4 = jax.random.split(key, 5)

    # Deterministic "PyTorch-default-like" init (kaiming-uniform bounds).
    bound1 = 1.0 / (Cin * 9) ** 0.5
    w1 = jax.random.uniform(k1, (Cmid, Cin, 3, 3), jnp.float32, -bound1, bound1)
    b1 = jax.random.uniform(k2, (Cmid,), jnp.float32, -bound1, bound1)
    bound2 = 1.0 / (Cmid * 9) ** 0.5
    w2 = jax.random.uniform(k3, (Cout, Cmid, 3, 3), jnp.float32, -bound2, bound2)
    b2 = jax.random.uniform(k4, (Cout,), jnp.float32, -bound2, bound2)
    # BatchNorm affine params: PyTorch default init (gamma=1, beta=0).
    g1 = jnp.ones((Cmid,), jnp.float32)
    be1 = jnp.zeros((Cmid,), jnp.float32)
    g2 = jnp.ones((Cout,), jnp.float32)
    be2 = jnp.zeros((Cout,), jnp.float32)

    x = jax.random.normal(kx, (B, Cin, H, W), jnp.float32)

    out = down_forward(x, w1, b1, g1, be1, w2, b2, g2, be2)
    out = jax.block_until_ready(out)

    ref = down_reference(x, w1, b1, g1, be1, w2, b2, g2, be2)
    assert out.shape == (B, Cout, H // 2, W // 2), out.shape
    assert jnp.allclose(out, ref, atol=1e-3, rtol=1e-3), \
        float(jnp.max(jnp.abs(out - ref)))

    print("KERNEL_OK")
</pallas_src>

<mosaic_0001>
module attributes {stable_mosaic.version = 11 : i64} {
  func.func @down_kernel(%arg0: memref<4x2x10x40xf32, #tpu.memory_space<vmem>>, %arg1: memref<3x40x64xf32, #tpu.memory_space<vmem>>, %arg2: memref<64x64xf32, #tpu.memory_space<vmem>>, %arg3: memref<1x64xf32, #tpu.memory_space<vmem>>, %arg4: memref<1x64xf32, #tpu.memory_space<vmem>>, %arg5: memref<3x80x64xf32, #tpu.memory_space<vmem>>, %arg6: memref<64x64xf32, #tpu.memory_space<vmem>>, %arg7: memref<1x64xf32, #tpu.memory_space<vmem>>, %arg8: memref<1x64xf32, #tpu.memory_space<vmem>>, %arg9: memref<16x64xf32, #tpu.memory_space<vmem>>, %arg10: memref<2x10x80xf32, #tpu.memory_space<vmem>>) attributes {dimension_semantics = [], scalar_prefetch = 0 : i64, scratch_operands = 1 : i64, tpu.core_type = #tpu.core_type<tc>} {
    %cst = arith.constant 0.000000e+00 : f32
    %0 = vector.broadcast %cst : f32 to vector<2x1x80xf32>
    %c0 = arith.constant 0 : index
    %c0_0 = arith.constant 0 : index
    %c0_1 = arith.constant 0 : index
    %1 = vector.load %arg10[%c0, %c0_0, %c0_1] : memref<2x10x80xf32, #tpu.memory_space<vmem>>, vector<2x1x80xf32>
    tpu.vector_store %arg10[%c0, %c0_0, %c0_1], %0 {strides = array<i32>} : memref<2x10x80xf32, #tpu.memory_space<vmem>>, vector<2x1x80xf32>,
    %c0_2 = arith.constant 0 : index
    %c9 = arith.constant 9 : index
    %c0_3 = arith.constant 0 : index
    %2 = vector.load %arg10[%c0_2, %c9, %c0_3] : memref<2x10x80xf32, #tpu.memory_space<vmem>>, vector<2x1x80xf32>
    tpu.vector_store %arg10[%c0_2, %c9, %c0_3], %0 {strides = array<i32>} : memref<2x10x80xf32, #tpu.memory_space<vmem>>, vector<2x1x80xf32>,
    %cst_4 = arith.constant 0.000000e+00 : f32
    %3 = vector.broadcast %cst_4 : f32 to vector<2x10x16xf32>
    %c0_5 = arith.constant 0 : index
    %c0_6 = arith.constant 0 : index
    %c64 = arith.constant 64 : index
    %4 = vector.load %arg10[%c0_5, %c0_6, %c64] : memref<2x10x80xf32, #tpu.memory_space<vmem>>, vector<2x10x16xf32>
    tpu.vector_store %arg10[%c0_5, %c0_6, %c64], %3 {strides = array<i32>} : memref<2x10x80xf32, #tpu.memory_space<vmem>>, vector<2x10x16xf32>,
    %c0_7 = arith.constant 0 : index
    %c0_8 = arith.constant 0 : index
    %c0_9 = arith.constant 0 : index
    %c0_10 = arith.constant 0 : index
    %5 = vector.load %arg0[%c0_7, %c0_8, %c0_9, %c0_10] : memref<4x2x10x40xf32, #tpu.memory_space<vmem>>, vector<1x2x10x40xf32>
    %6 = vector.shape_cast %5 : vector<1x2x10x40xf32> to vector<2x10x40xf32>
    %c1 = arith.constant 1 : index
    %c0_11 = arith.constant 0 : index
    %c0_12 = arith.constant 0 : index
    %c0_13 = arith.constant 0 : index
    %7 = vector.load %arg0[%c1, %c0_11, %c0_12, %c0_13] : memref<4x2x10x40xf32, #tpu.memory_space<vmem>>, vector<1x2x10x40xf32>
    %8 = vector.shape_cast %7 : vector<1x2x10x40xf32> to vector<2x10x40xf32>
    %9 = arith.maximumf %6, %8 : vector<2x10x40xf32>
    %c2 = arith.constant 2 : index
    %c0_14 = arith.constant 0 : index
    %c0_15 = arith.constant 0 : index
    %c0_16 = arith.constant 0 : index
    %10 = vector.load %arg0[%c2, %c0_14, %c0_15, %c0_16] : memref<4x2x10x40xf32, #tpu.memory_space<vmem>>, vector<1x2x10x40xf32>
    %11 = vector.shape_cast %10 : vector<1x2x10x40xf32> to vector<2x10x40xf32>
    %c3 = arith.constant 3 : index
    %c0_17 = arith.constant 0 : index
    %c0_18 = arith.constant 0 : index
    %c0_19 = arith.constant 0 : index
    %12 = vector.load %arg0[%c3, %c0_17, %c0_18, %c0_19] : memref<4x2x10x40xf32, #tpu.memory_space<vmem>>, vector<1x2x10x40xf32>
    %13 = vector.shape_cast %12 : vector<1x2x10x40xf32> to vector<2x10x40xf32>
    %14 = arith.maximumf %11, %13 : vector<2x10x40xf32>
    %15 = arith.maximumf %9, %14 : vector<2x10x40xf32>
    %cst_20 = arith.constant 1.000000e+00 : f32
    %16 = vector.broadcast %cst_20 : f32 to vector<1x16xf32>
    %17 = vector.extract_strided_slice %15 {offsets = [0, 0, 0], sizes = [2, 8, 40], strides = [1, 1, 1]} : vector<2x10x40xf32> to vector<2x8x40xf32>
    %18 = vector.shape_cast %17 : vector<2x8x40xf32> to vector<16x40xf32>
    %c0_21 = arith.constant 0 : index
    %c0_22 = arith.constant 0 : index
    %c0_23 = arith.constant 0 : index
    %19 = vector.load %arg1[%c0_21, %c0_22, %c0_23] : memref<3x40x64xf32, #tpu.memory_space<vmem>>, vector<1x40x64xf32>
    %20 = vector.shape_cast %19 : vector<1x40x64xf32> to vector<40x64xf32>
    %cst_24 = arith.constant dense<0.000000e+00> : vector<16x64xf32>
    %21 = tpu.matmul %18, %20, %cst_24 {dimension_numbers = #tpu.dot_dimension_numbers<[1], [0], [0], [1], [0, 0, 1, 1], [], []>} : vector<16x40xf32>, vector<40x64xf32>, vector<16x64xf32> -> vector<16x64xf32>
    %22 = vector.extract_strided_slice %15 {offsets = [0, 1, 0], sizes = [2, 8, 40], strides = [1, 1, 1]} : vector<2x10x40xf32> to vector<2x8x40xf32>
    %23 = vector.shape_cast %22 : vector<2x8x40xf32> to vector<16x40xf32>
    %c1_25 = arith.constant 1 : index
    %c0_26 = arith.constant 0 : index
    %c0_27 = arith.constant 0 : index
    %24 = vector.load %arg1[%c1_25, %c0_26, %c0_27] : memref<3x40x64xf32, #tpu.memory_space<vmem>>, vector<1x40x64xf32>
    %25 = vector.shape_cast %24 : vector<1x40x64xf32> to vector<40x64xf32>
    %cst_28 = arith.constant dense<0.000000e+00> : vector<16x64xf32>
    %26 = tpu.matmul %23, %25, %cst_28 {dimension_numbers = #tpu.dot_dimension_numbers<[1], [0], [0], [1], [0, 0, 1, 1], [], []>} : vector<16x40xf32>, vector<40x64xf32>, vector<16x64xf32> -> vector<16x64xf32>
    %27 = arith.addf %21, %26 : vector<16x64xf32>
    %28 = vector.extract_strided_slice %15 {offsets = [0, 2, 0], sizes = [2, 8, 40], strides = [1, 1, 1]} : vector<2x10x40xf32> to vector<2x8x40xf32>
    %29 = vector.shape_cast %28 : vector<2x8x40xf32> to vector<16x40xf32>
    %c2_29 = arith.constant 2 : index
    %c0_30 = arith.constant 0 : index
    %c0_31 = arith.constant 0 : index
    %30 = vector.load %arg1[%c2_29, %c0_30, %c0_31] : memref<3x40x64xf32, #tpu.memory_space<vmem>>, vector<1x40x64xf32>
    %31 = vector.shape_cast %30 : vector<1x40x64xf32> to vector<40x64xf32>
    %cst_32 = arith.constant dense<0.000000e+00> : vector<16x64xf32>
    %32 = tpu.matmul %29, %31, %cst_32 {dimension_numbers = #tpu.dot_dimension_numbers<[1], [0], [0], [1], [0, 0, 1, 1], [], []>} : vector<16x40xf32>, vector<40x64xf32>, vector<16x64xf32> -> vector<16x64xf32>
    %33 = arith.addf %27, %32 : vector<16x64xf32>
    %cst_33 = arith.constant dense<0.000000e+00> : vector<1x64xf32>
    %34 = tpu.matmul %16, %33, %cst_33 {dimension_numbers = #tpu.dot_dimension_numbers<[1], [0], [0], [1], [0, 0, 1, 1], [], []>} : vector<1x16xf32>, vector<16x64xf32>, vector<1x64xf32> -> vector<1x64xf32>
    %35 = arith.mulf %33, %33 : vector<16x64xf32>
    %cst_34 = arith.constant dense<0.000000e+00> : vector<1x64xf32>
    %36 = tpu.matmul %16, %35, %cst_34 {dimension_numbers = #tpu.dot_dimension_numbers<[1], [0], [0], [1], [0, 0, 1, 1], [], []>} : vector<1x16xf32>, vector<16x64xf32>, vector<1x64xf32> -> vector<1x64xf32>
    %c0_35 = arith.constant 0 : index
    %c0_36 = arith.constant 0 : index
    %37 = vector.load %arg2[%c0_35, %c0_36] : memref<64x64xf32, #tpu.memory_space<vmem>>, vector<64x64xf32>
    %cst_37 = arith.constant dense<0.000000e+00> : vector<1x64xf32>
    %38 = tpu.matmul %34, %37, %cst_37 {dimension_numbers = #tpu.dot_dimension_numbers<[1], [0], [0], [1], [0, 0, 1, 1], [], []>} : vector<1x64xf32>, vector<64x64xf32>, vector<1x64xf32> -> vector<1x64xf32>
    %c0_38 = arith.constant 0 : index
    %c0_39 = arith.constant 0 : index
    %39 = vector.load %arg2[%c0_38, %c0_39] : memref<64x64xf32, #tpu.memory_space<vmem>>, vector<64x64xf32>
    %cst_40 = arith.constant dense<0.000000e+00> : vector<1x64xf32>
    %40 = tpu.matmul %36, %39, %cst_40 {dimension_numbers = #tpu.dot_dimension_numbers<[1], [0], [0], [1], [0, 0, 1, 1], [], []>} : vector<1x64xf32>, vector<64x64xf32>, vector<1x64xf32> -> vector<1x64xf32>
    %41 = arith.mulf %38, %38 : vector<1x64xf32>
    %42 = arith.subf %40, %41 : vector<1x64xf32>
    %cst_41 = arith.constant 0.000000e+00 : f32
    %43 = vector.broadcast %cst_41 : f32 to vector<1x64xf32>
    %44 = arith.maximumf %42, %43 : vector<1x64xf32>
    %c0_42 = arith.constant 0 : index
    %c0_43 = arith.constant 0 : index
    %45 = vector.load %arg3[%c0_42, %c0_43] : memref<1x64xf32, #tpu.memory_space<vmem>>, vector<1x64xf32>
    %cst_44 = arith.constant 9.99999974E-6 : f32
    %46 = vector.broadcast %cst_44 : f32 to vector<1x64xf32>
    %47 = arith.addf %44, %46 : vector<1x64xf32>
    %48 = math.rsqrt %47 : vector<1x64xf32>
    %49 = arith.mulf %45, %48 : vector<1x64xf32>
    %c0_45 = arith.constant 0 : index
    %c0_46 = arith.constant 0 : index
    %50 = vector.load %arg4[%c0_45, %c0_46] : memref<1x64xf32, #tpu.memory_space<vmem>>, vector<1x64xf32>
    %51 = arith.mulf %38, %49 : vector<1x64xf32>
    %52 = arith.subf %50, %51 : vector<1x64xf32>
    %53 = vector.broadcast %49 : vector<1x64xf32> to vector<16x64xf32>
    %54 = arith.mulf %33, %53 : vector<16x64xf32>
    %55 = vector.broadcast %52 : vector<1x64xf32> to vector<16x64xf32>
    %56 = arith.addf %54, %55 : vector<16x64xf32>
    %cst_47 = arith.constant 0.000000e+00 : f32
    %57 = vector.broadcast %cst_47 : f32 to vector<16x64xf32>
    %58 = arith.maximumf %56, %57 : vector<16x64xf32>
    %59 = vector.shape_cast %58 : vector<16x64xf32> to vector<2x8x64xf32>
    %c0_48 = arith.constant 0 : index
    %c1_49 = arith.constant 1 : index
    %c0_50 = arith.constant 0 : index
    %60 = vector.load %arg10[%c0_48, %c1_49, %c0_50] : memref<2x10x80xf32, #tpu.memory_space<vmem>>, vector<2x8x64xf32>
    tpu.vector_store %arg10[%c0_48, %c1_49, %c0_50], %59 {strides = array<i32>} : memref<2x10x80xf32, #tpu.memory_space<vmem>>, vector<2x8x64xf32>,
    %c0_51 = arith.constant 0 : index
    %c0_52 = arith.constant 0 : index
    %c0_53 = arith.constant 0 : index
    %61 = vector.load %arg10[%c0_51, %c0_52, %c0_53] : memref<2x10x80xf32, #tpu.memory_space<vmem>>, vector<2x8x80xf32>
    %62 = vector.shape_cast %61 : vector<2x8x80xf32> to vector<16x80xf32>
    %c0_54 = arith.constant 0 : index
    %c0_55 = arith.constant 0 : index
    %c0_56 = arith.constant 0 : index
    %63 = vector.load %arg5[%c0_54, %c0_55, %c0_56] : memref<3x80x64xf32, #tpu.memory_space<vmem>>, vector<1x80x64xf32>
    %64 = vector.shape_cast %63 : vector<1x80x64xf32> to vector<80x64xf32>
    %cst_57 = arith.constant dense<0.000000e+00> : vector<16x64xf32>
    %65 = tpu.matmul %62, %64, %cst_57 {dimension_numbers = #tpu.dot_dimension_numbers<[1], [0], [0], [1], [0, 0, 1, 1], [], []>} : vector<16x80xf32>, vector<80x64xf32>, vector<16x64xf32> -> vector<16x64xf32>
    %c0_58 = arith.constant 0 : index
    %c1_59 = arith.constant 1 : index
    %c0_60 = arith.constant 0 : index
    %66 = vector.load %arg10[%c0_58, %c1_59, %c0_60] : memref<2x10x80xf32, #tpu.memory_space<vmem>>, vector<2x8x80xf32>
    %67 = vector.shape_cast %66 : vector<2x8x80xf32> to vector<16x80xf32>
    %c1_61 = arith.constant 1 : index
    %c0_62 = arith.constant 0 : index
    %c0_63 = arith.constant 0 : index
    %68 = vector.load %arg5[%c1_61, %c0_62, %c0_63] : memref<3x80x64xf32, #tpu.memory_space<vmem>>, vector<1x80x64xf32>
    %69 = vector.shape_cast %68 : vector<1x80x64xf32> to vector<80x64xf32>
    %cst_64 = arith.constant dense<0.000000e+00> : vector<16x64xf32>
    %70 = tpu.matmul %67, %69, %cst_64 {dimension_numbers = #tpu.dot_dimension_numbers<[1], [0], [0], [1], [0, 0, 1, 1], [], []>} : vector<16x80xf32>, vector<80x64xf32>, vector<16x64xf32> -> vector<16x64xf32>
    %71 = arith.addf %65, %70 : vector<16x64xf32>
    %c0_65 = arith.constant 0 : index
    %c2_66 = arith.constant 2 : index
    %c0_67 = arith.constant 0 : index
    %72 = vector.load %arg10[%c0_65, %c2_66, %c0_67] : memref<2x10x80xf32, #tpu.memory_space<vmem>>, vector<2x8x80xf32>
    %73 = vector.shape_cast %72 : vector<2x8x80xf32> to vector<16x80xf32>
    %c2_68 = arith.constant 2 : index
    %c0_69 = arith.constant 0 : index
    %c0_70 = arith.constant 0 : index
    %74 = vector.load %arg5[%c2_68, %c0_69, %c0_70] : memref<3x80x64xf32, #tpu.memory_space<vmem>>, vector<1x80x64xf32>
    %75 = vector.shape_cast %74 : vector<1x80x64xf32> to vector<80x64xf32>
    %cst_71 = arith.constant dense<0.000000e+00> : vector<16x64xf32>
    %76 = tpu.matmul %73, %75, %cst_71 {dimension_numbers = #tpu.dot_dimension_numbers<[1], [0], [0], [1], [0, 0, 1, 1], [], []>} : vector<16x80xf32>, vector<80x64xf32>, vector<16x64xf32> -> vector<16x64xf32>
    %77 = arith.addf %71, %76 : vector<16x64xf32>
    %cst_72 = arith.constant dense<0.000000e+00> : vector<1x64xf32>
    %78 = tpu.matmul %16, %77, %cst_72 {dimension_numbers = #tpu.dot_dimension_numbers<[1], [0], [0], [1], [0, 0, 1, 1], [], []>} : vector<1x16xf32>, vector<16x64xf32>, vector<1x64xf32> -> vector<1x64xf32>
    %79 = arith.mulf %77, %77 : vector<16x64xf32>
    %cst_73 = arith.constant dense<0.000000e+00> : vector<1x64xf32>
    %80 = tpu.matmul %16, %79, %cst_73 {dimension_numbers = #tpu.dot_dimension_numbers<[1], [0], [0], [1], [0, 0, 1, 1], [], []>} : vector<1x16xf32>, vector<16x64xf32>, vector<1x64xf32> -> vector<1x64xf32>
    %c0_74 = arith.constant 0 : index
    %c0_75 = arith.constant 0 : index
    %81 = vector.load %arg6[%c0_74, %c0_75] : memref<64x64xf32, #tpu.memory_space<vmem>>, vector<64x64xf32>
    %cst_76 = arith.constant dense<0.000000e+00> : vector<1x64xf32>
    %82 = tpu.matmul %78, %81, %cst_76 {dimension_numbers = #tpu.dot_dimension_numbers<[1], [0], [0], [1], [0, 0, 1, 1], [], []>} : vector<1x64xf32>, vector<64x64xf32>, vector<1x64xf32> -> vector<1x64xf32>
    %c0_77 = arith.constant 0 : index
    %c0_78 = arith.constant 0 : index
    %83 = vector.load %arg6[%c0_77, %c0_78] : memref<64x64xf32, #tpu.memory_space<vmem>>, vector<64x64xf32>
    %cst_79 = arith.constant dense<0.000000e+00> : vector<1x64xf32>
    %84 = tpu.matmul %80, %83, %cst_79 {dimension_numbers = #tpu.dot_dimension_numbers<[1], [0], [0], [1], [0, 0, 1, 1], [], []>} : vector<1x64xf32>, vector<64x64xf32>, vector<1x64xf32> -> vector<1x64xf32>
    %85 = arith.mulf %82, %82 : vector<1x64xf32>
    %86 = arith.subf %84, %85 : vector<1x64xf32>
    %cst_80 = arith.constant 0.000000e+00 : f32
    %87 = vector.broadcast %cst_80 : f32 to vector<1x64xf32>
    %88 = arith.maximumf %86, %87 : vector<1x64xf32>
    %c0_81 = arith.constant 0 : index
    %c0_82 = arith.constant 0 : index
    %89 = vector.load %arg7[%c0_81, %c0_82] : memref<1x64xf32, #tpu.memory_space<vmem>>, vector<1x64xf32>
    %cst_83 = arith.constant 9.99999974E-6 : f32
    %90 = vector.broadcast %cst_83 : f32 to vector<1x64xf32>
    %91 = arith.addf %88, %90 : vector<1x64xf32>
    %92 = math.rsqrt %91 : vector<1x64xf32>
    %93 = arith.mulf %89, %92 : vector<1x64xf32>
    %c0_84 = arith.constant 0 : index
    %c0_85 = arith.constant 0 : index
    %94 = vector.load %arg8[%c0_84, %c0_85] : memref<1x64xf32, #tpu.memory_space<vmem>>, vector<1x64xf32>
    %95 = arith.mulf %82, %93 : vector<1x64xf32>
    %96 = arith.subf %94, %95 : vector<1x64xf32>
    %97 = vector.broadcast %93 : vector<1x64xf32> to vector<16x64xf32>
    %98 = arith.mulf %77, %97 : vector<16x64xf32>
    %99 = vector.broadcast %96 : vector<1x64xf32> to vector<16x64xf32>
    %100 = arith.addf %98, %99 : vector<16x64xf32>
    %cst_86 = arith.constant 0.000000e+00 : f32
    %101 = vector.broadcast %cst_86 : f32 to vector<16x64xf32>
    %102 = arith.maximumf %100, %101 : vector<16x64xf32>
    %c0_87 = arith.constant 0 : index
    %c0_88 = arith.constant 0 : index
    %103 = vector.load %arg9[%c0_87, %c0_88] : memref<16x64xf32, #tpu.memory_space<vmem>>, vector<16x64xf32>
    tpu.vector_store %arg9[%c0_87, %c0_88], %102 {strides = array<i32>} : memref<16x64xf32, #tpu.memory_space<vmem>>, vector<16x64xf32>,
    return
  }
}

</mosaic_0001>

<bundles_post_ra>
// kernel: tile.23
= control target key start
LH: loop header
LB: loop body
LE: loop exit
PB: predicated region body
PF: predicated region fallthrough
CT: control target
= control target key end

     0   :  { %s22_s0 = inlined_call_operand.vmem [shape: f32[8], index: 0, kind: input, shape index: {}]   ;;  %s23_s1 = inlined_call_operand.vmem [shape: f32[8,8], index: 1, kind: output, shape index: {}]  }
   0x1   :  { %v4_v0 = vld [vmem:[%s22_s0] ss:$0 sm:$0xff] }
   0x2   :  { %5 = vst [vmem:[%s23_s1] sm:$0xff] %v4_v0 }

// kernel: tile.24
= control target key start
LH: loop header
LB: loop body
LE: loop exit
PB: predicated region body
PF: predicated region fallthrough
CT: control target
= control target key end

     0   :  { %s67_s10 = smov 56   ;;  %s68_s11 = smov 40   ;;  %vm3_vm0 = vcmask 64512   ;;  %vm9_vm1 = vcmask 523712   ;;  %vm15_vm2 = vcmask 458112   ;;  %vm21_vm3 = vcmask 392512   ;;  %s111_s0 = inlined_call_operand.vmem [shape: f32[8,8], index: 0, kind: input, shape index: {}]   ;;  %s112_s1 = inlined_call_operand.vmem [shape: f32[1,64], index: 1, kind: output, shape index: {}]  }
   0x1   :  { %v53_v0 = vld [vmem:[%s111_s0 + $0x7] sm:$0x1]   ;;  %v55_v1 = vld [vmem:[%s111_s0 + $0x5] sm:$0x1]   ;;  %v57_v2 = vld [vmem:[%s111_s0 + $0x3] sm:$0x1]  }
   0x2   :  { %7 = vrot.lane.b32.xlu0 %v53_v0, %s67_s10  ;;  %19 = vrot.lane.b32.xlu1 %v55_v1, %s68_s11  ;;  %s69_s14 = smov 24   ;;  %v54_v3 = vld [vmem:[%s111_s0 + $0x6] sm:$0x1]   ;;  %v56_v4 = vld [vmem:[%s111_s0 + $0x4] sm:$0x1]   ;;  %s70_s21 = smov 48  }
   0x3   :  { %31 = vrot.lane.b32.xlu2 %v57_v2, %s69_s14  ;;  %v58_v5 = vld [vmem:[%s111_s0 + $0x2] sm:$0x1]   ;;  %s71_s22 = smov 32   ;;  %s72_s23 = smov 16   ;;  %v59_v6 = vld [vmem:[%s111_s0 + $0x1] sm:$0x1]  }
   0x4   :  { %s73_s26 = smov 8   ;;  %v2_v7 = vld [vmem:[%s111_s0] sm:$0x1]   ;;  %vm27_vm4 = vcmask 326912   ;;  %vm33_vm5 = vcmask 261312   ;;  %vm39_vm6 = vcmask 195712  }
   0x5   :  { %4 = vst.msk [vmem:[#allocation0] sm:$0x1] %vm3_vm0, %v2_v7   ;;  %vm45_vm7 = vcmask 130112  }
   0xa   :  { %13 = vrot.lane.b32.xlu0 %v54_v3, %s70_s21  ;;  %25 = vrot.lane.b32.xlu1 %v56_v4, %s71_s22 }
   0xb   :  { %37 = vrot.lane.b32.xlu2 %v58_v5, %s72_s23 }
  0x12   :  { %43 = vrot.lane.b32.xlu0 %v59_v6, %s73_s26 }
  0x5d   :  { %v32_v8 = vpop.permute.xlu2 %31  }
  0x65   :  { %v38_v9 = vpop.permute.xlu2 %37  }
  0x74   :  { %v8_v10 = vpop.permute.xlu0 %7   ;;  %v20_v11 = vpop.permute.xlu1 %19  }
  0x75   :  { %10 = vst.msk [vmem:[#allocation0] sm:$0x1] %vm9_vm1, %v8_v10  }
  0x7c   :  { %v14_v12 = vpop.permute.xlu0 %13   ;;  %v26_v13 = vpop.permute.xlu1 %25  }
  0x7d   :  { %16 = vst.msk [vmem:[#allocation0] sm:$0x1] %vm15_vm2, %v14_v12  }
  0x7e   :  { %22 = vst.msk [vmem:[#allocation0] sm:$0x1] %vm21_vm3, %v20_v11  }
  0x7f   :  { %28 = vst.msk [vmem:[#allocation0] sm:$0x1] %vm27_vm4, %v26_v13  }
  0x80   :  { %34 = vst.msk [vmem:[#allocation0] sm:$0x1] %vm33_vm5, %v32_v8  }
  0x81   :  { %40 = vst.msk [vmem:[#allocation0] sm:$0x1] %vm39_vm6, %v38_v9  }
  0x84   :  { %v44_v14 = vpop.permute.xlu0 %43  }
  0x85   :  { %46 = vst.msk [vmem:[#allocation0] sm:$0x1] %vm45_vm7, %v44_v14  }
  0x8c   :  { %v49_v15 = vld [vmem:[#allocation0] sm:$0x1] }
  0x8d   :  { %52 = vst [vmem:[%s112_s1] sm:$0x1] %v49_v15 }

// kernel: down_forward.1
= control target key start
LH: loop header
LB: loop body
LE: loop exit
PB: predicated region body
PF: predicated region fallthrough
CT: control target
= control target key end

     0   :  { %vm96_vm0 = vcmask 326656   ;;  %vm151_vm1 = vcmask 1045504   ;;  %vm83_vm2 = vcmask 1046528   ;;  %vm193_vm3 = vcmask 130048   ;;  %s1000_s1 = inlined_call_operand.vmem [shape: f32[3,40,64], index: 1, kind: input, shape index: {}]   ;;  %s1001_s0 = inlined_call_operand.vmem [shape: f32[4,2,10,40], index: 0, kind: input, shape index: {}]   ;;  %s1002_s2 = inlined_call_operand.vmem [shape: f32[64,64], index: 2, kind: input, shape index: {}, may-alias: {2,6}]   ;;  %s1003_s5 = inlined_call_operand.vmem [shape: f32[3,80,64], index: 5, kind: input, shape index: {}]   ;;  %s1004_s3 = inlined_call_operand.vmem [shape: f32[1,64], index: 3, kind: input, shape index: {}]   ;;  %s1005_s4 = inlined_call_operand.vmem [shape: f32[1,64], index: 4, kind: input, shape index: {}]   ;;  %s1006_s6 = inlined_call_operand.vmem [shape: f32[64,64], index: 6, kind: input, shape index: {}, may-alias: {2,6}]   ;;  %s1007_s7 = inlined_call_operand.vmem [shape: f32[1,64], index: 7, kind: input, shape index: {}]   ;;  %s1008_s8 = inlined_call_operand.vmem [shape: f32[1,64], index: 8, kind: input, shape index: {}]   ;;  %s1009_s9 = inlined_call_operand.vmem [shape: f32[16,64], index: 9, kind: output, shape index: {}]  }
   0x1   :  { %v613_v0 = vld [vmem:[%s1000_s1 + $0x70] sm:$0xff]  ;;  %v612_v1 = vld [vmem:[%s1000_s1 + $0x68] sm:$0xff]  ;;  %v78_v3 = vld [vmem:[%s1000_s1 + $0x20] sm:$0xff]  ;;  %vm247_vm4 = vcmask 523264   ;;  %vm32_vm5 = vcmask 647168   ;;  %vm37_vm6 = vcmask 654848  }
   0x2   :  { %v604_v2 = vld [vmem:[%s1000_s1 + $0x48] sm:$0xff]  ;;  %179 = vmatpush.msra.mxu2 %v613_v0  ;;  %v603_v4 = vld [vmem:[%s1000_s1 + $0x40] sm:$0xff]  ;;  %139 = vmatpush.msra.mxu1 %v78_v3  ;;  %v77_v6 = vld [vmem:[%s1000_s1 + $0x18] sm:$0xff]  ;;  %vm39_vm7 = vcmask 648704   ;;  %vm352_vm11 = vcmask 654336  }
   0x3   :  { %112 = vmatpush.msra.mxu0 %v604_v2  ;;  %v611_v5 = vld [vmem:[%s1000_s1 + $0x60] sm:$0xff]  ;;  %v602_v7 = vld [vmem:[%s1000_s1 + $0x38] sm:$0xff]  ;;  %v76_v9 = vld [vmem:[%s1000_s1 + $0x10] sm:$0xff] }
   0x4   :  { %180 = vmatpush.msra.mxu2 %v612_v1  ;;  %v610_v8 = vld [vmem:[%s1000_s1 + $0x58] sm:$0xff]  ;;  %v43_v10 = vld [vmem:[%s1001_s0] sm:$0xff]  ;;  %140 = vmatpush.msra.mxu1 %v77_v6  ;;  %v609_v11 = vld [vmem:[%s1000_s1 + $0x50] sm:$0xff] }
   0x5   :  { %113 = vmatpush.msra.mxu0 %v603_v4  ;;  %v44_v12 = vld [vmem:[%s1001_s0 + $0x8] sm:$0x3]  ;;  %v588_v13 = vld [vmem:[%s1001_s0 + $0x20] sm:$0xff]  ;;  %v601_v22 = vld [vmem:[%s1000_s1 + $0x30] sm:$0xff] }
   0x6   :  { %v589_v14 = vld [vmem:[%s1001_s0 + $0x28] sm:$0x3]  ;;  %181 = vmatpush.msra.mxu2 %v611_v5  ;;  %v52_v15 = vmax.f32 %v43_v10, %v588_v13  ;;  %v592_v17 = vld [vmem:[%s1001_s0 + $0x40] sm:$0xff]  ;;  %141 = vmatpush.msra.mxu1 %v76_v9  ;;  %v45_v27 = vld [vmem:[%s1001_s0 + $0x10] sm:$0xff]  ;;  %v656_v9 = vmov 1.0  }
   0x7   :  { %114 = vmatpush.msra.mxu0 %v602_v7  ;;  %v53_v16 = vmax.f32 %v44_v12, %v589_v14  ;;  %v593_v18 = vld [vmem:[%s1001_s0 + $0x48] sm:$0x3]  ;;  %v596_v19 = vld [vmem:[%s1001_s0 + $0x60] sm:$0xff]  ;;  %v46_v29 = vld [vmem:[%s1001_s0 + $0x18] sm:$0x3]  ;;  %v657_v14 = vmov 0.0  }
   0x8   :  { %v597_v20 = vld [vmem:[%s1001_s0 + $0x68] sm:$0x3]  ;;  %v66_v21 = vmax.f32 %v592_v17, %v596_v19  ;;  %182 = vmatpush.msra.mxu2 %v610_v8  ;;  %v74_v26 = vld [vmem:[%s1000_s1] sm:$0xff]  ;;  %v590_v30 = vld [vmem:[%s1001_s0 + $0x30] sm:$0xff]  ;;  %33 = vst.msk [vmem:[#allocation2] sm:$0x1] %vm32_vm5, %v657_v14 }
   0x9   :  { %v75_v23 = vld [vmem:[%s1000_s1 + $0x8] sm:$0xff]  ;;  %v67_v24 = vmax.f32 %v593_v18, %v597_v20  ;;  %115 = vmatpush.msra.mxu0 %v601_v22  ;;  %v591_v31 = vld [vmem:[%s1001_s0 + $0x38] sm:$0x3]  ;;  %v54_v33 = vmax.f32 %v45_v27, %v590_v30  ;;  %v594_v35 = vld [vmem:[%s1001_s0 + $0x50] sm:$0xff]  ;;  %34 = vst.msk [vmem:[#allocation2 + $0x10] sm:$0x1] %vm32_vm5, %v657_v14 }
   0xa   :  { %v600_v25 = vld [vmem:[%s1000_s1 + $0x28] sm:$0xff]  ;;  %v70_v28 = vmax.f32 %v52_v15, %v66_v21  ;;  %142 = vmatpush.msra.mxu1 %v75_v23  ;;  %183 = vmatpush.msra.mxu2 %v609_v11  ;;  %v55_v34 = vmax.f32 %v46_v29, %v591_v31  ;;  %v595_v36 = vld [vmem:[%s1001_s0 + $0x58] sm:$0x3]  ;;  %v598_v37 = vld [vmem:[%s1001_s0 + $0x70] sm:$0xff]  ;;  %35 = vst.msk [vmem:[#allocation2 + $0x9] sm:$0x1] %vm32_vm5, %v657_v14 }
   0xb   :  { %v71_v32 = vmax.f32 %v53_v16, %v67_v24  ;;  %116 = vmatpush.msra.mxu0 %v600_v25  ;;  %v599_v40 = vld [vmem:[%s1001_s0 + $0x78] sm:$0x3]  ;;  %v68_v41 = vmax.f32 %v594_v35, %v598_v37  ;;  %v245_v56 = vld [vmem:[%s1002_s2 + $0x30] sm:$0xff]  ;;  %v244_v58 = vld [vmem:[%s1002_s2 + $0x28] sm:$0xff]  ;;  %36 = vst.msk [vmem:[#allocation2 + $0x19] sm:$0x1] %vm32_vm5, %v657_v14 }
   0xc   :  { %v152_v38 = vrot.slane %v70_v28, 2  ;;  %143 = vmatpush.msra.mxu1 %v74_v26  ;;  %v84_v39 = vrot.slane %v70_v28, 1  ;;  %v69_v44 = vmax.f32 %v595_v36, %v599_v40  ;;  %v246_v55 = vld [vmem:[%s1002_s2 + $0x38] sm:$0xff]  ;;  %v243_v60 = vld [vmem:[%s1002_s2 + $0x20] sm:$0xff]  ;;  %v241_v62 = vld [vmem:[%s1002_s2 + $0x10] sm:$0xff]  ;;  %38 = vst.msk [vmem:[#allocation2] sm:$0xff] %vm37_vm6, %v657_v14 }
   0xd   :  { %v153_v42 = vrot.slane %v71_v32, 2  ;;  %v85_v43 = vrot.slane %v71_v32, 1  ;;  %607 = vmatmul.msk.f32.vlgmr.msra.gmra.mxu1 %vm96_vm0, %v70_v28  ;;  %v72_v45 = vmax.f32 %v54_v33, %v68_v41  ;;  %259 = vmatpush.msrb.mxu0 %v246_v55  ;;  %v242_v61 = vld [vmem:[%s1002_s2 + $0x18] sm:$0xff]  ;;  %v240_v0 = vld [vmem:[%s1002_s2 + $0x8] sm:$0xff]  ;;  %v239_v11 = vld [vmem:[%s1002_s2] sm:$0xff]  ;;  %41 = vst.msk [vmem:[#allocation2 + $0x10] sm:$0xff] %vm37_vm6, %v657_v14 }
   0xe   :  { %v73_v48 = vmax.f32 %v55_v34, %v69_v44  ;;  %282 = vmatpush.msrb.mxu1 %v246_v55  ;;  %40 = vst.msk [vmem:[#allocation2 + $0x8] sm:$0x3] %vm39_vm7, %v657_v14  ;;  %v629_v15 = vld [vmem:[%s1003_s5 + $0x98] sm:$0xff]  ;;  %v338_v16 = vld [vmem:[%s1003_s5 + $0x48] sm:$0xff]  ;;  %v628_v19 = vld [vmem:[%s1003_s5 + $0x90] sm:$0xff] }
   0xf   :  { %v154_v46 = vsel %vm151_vm1, %v152_v38, %v153_v42  ;;  %v86_v47 = vsel %vm83_vm2, %v84_v39, %v85_v43  ;;  %v155_v49 = vrot.slane %v72_v45, 2  ;;  %v87_v51 = vrot.slane %v72_v45, 1  ;;  %260 = vmatpush.msrb.mxu0 %v245_v56  ;;  %42 = vst.msk [vmem:[#allocation2 + $0x18] sm:$0x3] %vm39_vm7, %v657_v14  ;;  %v643_v17 = vld [vmem:[%s1003_s5 + $0xe8] sm:$0xff]  ;;  %365 = vmatpush.msrb.mxu2 %v629_v15  ;;  %v337_v20 = vld [vmem:[%s1003_s5 + $0x40] sm:$0xff] }
  0x10   :  { %614 = vmatmul.msk.f32.vlgmr.msra.gmra.mxu2 %vm96_vm0, %v154_v46  ;;  %605 = vmatmul.msk.f32.vlgmr.msra.gmra.mxu0 %vm96_vm0, %v86_v47  ;;  %v156_v50 = vrot.slane %v73_v48, 2  ;;  %v88_v52 = vrot.slane %v73_v48, 1  ;;  %v642_v21 = vld [vmem:[%s1003_s5 + $0xe0] sm:$0xff]  ;;  %v627_v22 = vld [vmem:[%s1003_s5 + $0x88] sm:$0xff]  ;;  %v336_v23 = vld [vmem:[%s1003_s5 + $0x38] sm:$0xff] }
  0x11   :  { %283 = vmatpush.msrb.mxu1 %v245_v56  ;;  %261 = vmatpush.msrb.mxu0 %v244_v58  ;;  %v641_v24 = vld [vmem:[%s1003_s5 + $0xd8] sm:$0xff]  ;;  %v626_v27 = vld [vmem:[%s1003_s5 + $0x80] sm:$0xff]  ;;  %v335_v28 = vld [vmem:[%s1003_s5 + $0x30] sm:$0xff] }
  0x12   :  { %v157_v53 = vsel %vm151_vm1, %v155_v49, %v156_v50  ;;  %v89_v54 = vsel %vm83_vm2, %v87_v51, %v88_v52  ;;  %366 = vmatpush.msrb.mxu2 %v628_v19  ;;  %v640_v29 = vld [vmem:[%s1003_s5 + $0xd0] sm:$0xff]  ;;  %v625_v31 = vld [vmem:[%s1003_s5 + $0x78] sm:$0xff]  ;;  %v334_v32 = vld [vmem:[%s1003_s5 + $0x28] sm:$0xff] }
  0x13   :  { %284 = vmatpush.msrb.mxu1 %v244_v58  ;;  %262 = vmatpush.msrb.mxu0 %v243_v60  ;;  %v639_v33 = vld [vmem:[%s1003_s5 + $0xc8] sm:$0xff]  ;;  %v624_v35 = vld [vmem:[%s1003_s5 + $0x70] sm:$0xff]  ;;  %v333_v36 = vld [vmem:[%s1003_s5 + $0x20] sm:$0xff] }
  0x14   :  { %367 = vmatpush.msrb.mxu2 %v627_v22  ;;  %v638_v37 = vld [vmem:[%s1003_s5 + $0xc0] sm:$0xff]  ;;  %v623_v39 = vld [vmem:[%s1003_s5 + $0x68] sm:$0xff]  ;;  %v332_v40 = vld [vmem:[%s1003_s5 + $0x18] sm:$0xff] }
  0x15   :  { %608 = vmatmul.msk.f32.gmra.mxu1 %vm96_vm0, %v72_v45  ;;  %263 = vmatpush.msrb.mxu0 %v242_v61  ;;  %v637_v41 = vld [vmem:[%s1003_s5 + $0xb8] sm:$0xff]  ;;  %v622_v42 = vld [vmem:[%s1003_s5 + $0x60] sm:$0xff]  ;;  %v331_v43 = vld [vmem:[%s1003_s5 + $0x10] sm:$0xff] }
  0x16   :  { %285 = vmatpush.msrb.mxu1 %v243_v60  ;;  %368 = vmatpush.msrb.mxu2 %v626_v27  ;;  %v636_v44 = vld [vmem:[%s1003_s5 + $0xb0] sm:$0xff]  ;;  %v621_v45 = vld [vmem:[%s1003_s5 + $0x58] sm:$0xff]  ;;  %v330_v46 = vld [vmem:[%s1003_s5 + $0x8] sm:$0xff] }
  0x17   :  { %264 = vmatpush.msrb.mxu0 %v241_v62  ;;  %v635_v47 = vld [vmem:[%s1003_s5 + $0xa8] sm:$0xff]  ;;  %v620_v48 = vld [vmem:[%s1003_s5 + $0x50] sm:$0xff]  ;;  %v329_v49 = vld [vmem:[%s1003_s5] sm:$0xff] }
  0x18   :  { %615 = vmatmul.msk.f32.gmra.mxu2 %vm96_vm0, %v157_v53  ;;  %606 = vmatmul.msk.f32.gmra.mxu0 %vm96_vm0, %v89_v54  ;;  %v634_v50 = vld [vmem:[%s1003_s5 + $0xa0] sm:$0xff]  ;;  %v504_v14 = vld [vmem:[%s1006_s6 + $0x38] sm:$0xff]  ;;  %v503_v15 = vld [vmem:[%s1006_s6 + $0x30] sm:$0xff] }
  0x19   :  { %286 = vmatpush.msrb.mxu1 %v242_v61  ;;  %265 = vmatpush.msrb.mxu0 %v240_v0  ;;  %v297_v56 = vld [vmem:[%s1004_s3] sm:$0x1] }
  0x1a   :  { %369 = vmatpush.msrb.mxu2 %v625_v31  ;;  %v310_v60 = vld [vmem:[%s1005_s4] sm:$0x1]  ;;  %v499_v31 = vld [vmem:[%s1006_s6 + $0x10] sm:$0xff] }
  0x1b   :  { %287 = vmatpush.msrb.mxu1 %v241_v62  ;;  %266 = vmatpush.msrb.mxu0 %v239_v11 }
  0x1c   :  { %370 = vmatpush.msrb.mxu2 %v624_v35 }
  0x1d   :  { %288 = vmatpush.msrb.mxu1 %v240_v0  ;;  %436 = vmatpush.msra.mxu0 %v643_v17  ;;  %v501_v17 = vld [vmem:[%s1006_s6 + $0x20] sm:$0xff] }
  0x1e   :  { %371 = vmatpush.msrb.mxu2 %v623_v39 }
  0x1f   :  { %289 = vmatpush.msrb.mxu1 %v239_v11  ;;  %437 = vmatpush.msra.mxu0 %v642_v21 }
  0x20   :  { %372 = vmatpush.msrb.mxu2 %v622_v42 }
  0x21   :  { %438 = vmatpush.msra.mxu0 %v641_v24 }
  0x22   :  { %373 = vmatpush.msrb.mxu2 %v621_v45 }
  0x23   :  { %439 = vmatpush.msra.mxu0 %v640_v29 }
  0x24   :  { %374 = vmatpush.msrb.mxu2 %v620_v48 }
  0x25   :  { %440 = vmatpush.msra.mxu0 %v639_v33  ;;  %v497_v33 = vld [vmem:[%s1006_s6] sm:$0xff] }
  0x26   :  { %516 = vmatpush.msra.mxu2 %v504_v14 }
  0x27   :  { %441 = vmatpush.msra.mxu0 %v638_v37 }
  0x28   :  { %517 = vmatpush.msra.mxu2 %v503_v15 }
  0x29   :  { %442 = vmatpush.msra.mxu0 %v637_v41 }
  0x2b   :  { %443 = vmatpush.msra.mxu0 %v636_v44 }
  0x2d   :  { %444 = vmatpush.msra.mxu0 %v635_v47 }
  0x2f   :  { %445 = vmatpush.msra.mxu0 %v634_v50  ;;  %v567_v50 = vld [vmem:[%s1008_s8] sm:$0x1] }
  0x8a   :  { %v145_v57 = vpop.f32.mrf.mxu1 }
  0x8d   :  { %v118_v59 = vpop.f32.mrf.mxu0 }
  0x8e   :  { %v146_v4 = vadd.f32 %v145_v57, %v118_v59 }
  0x92   :  { %v148_v2 = vpop.f32.mrf.mxu1 }
  0x93   :  { %v185_v63 = vpop.f32.mrf.mxu2 }
  0x94   :  { %v834_v7 = vadd.f32 %v185_v63, %v146_v4 }
  0x95   :  { %v121_v1 = vpop.f32.mrf.mxu0 }
  0x96   :  { %v149_v3 = vadd.f32 %v148_v2, %v121_v1  ;;  %v217_v10 = vmul.f32 %v834_v7, %v834_v7 }
  0x9b   :  { %v188_v5 = vpop.f32.mrf.mxu2 }
  0x9c   :  { %v832_v6 = vadd.f32 %v188_v5, %v149_v3 }
  0x9e   :  { %211 = vmatpush.msra.mxu3 %v832_v6  ;;  %v218_v8 = vmul.f32 %v832_v6, %v832_v6 }
  0xa0   :  { %212 = vmatpush.msra.mxu3 %v834_v7 }
  0xa1   :  { %616 = vmatmul.msk.f32.vlgmr.msra.gmra.mxu3 %vm193_vm3, %v656_v9 }
  0xa2   :  { %233 = vmatpush.msrb.mxu3 %v218_v8 }
  0xa4   :  { %234 = vmatpush.msrb.mxu3 %v217_v10 }
  0xa6   :  { %394 = vmatpush.msra.mxu3 %v338_v16  ;;  %v502_v16 = vld [vmem:[%s1006_s6 + $0x28] sm:$0xff] }
  0xa7   :  { %518 = vmatpush.msra.mxu2 %v502_v16 }
  0xa8   :  { %395 = vmatpush.msra.mxu3 %v337_v20 }
  0xa9   :  { %617 = vmatmul.msk.f32.vlgmr.msrb.gmra.mxu3 %vm193_vm3, %v656_v9  ;;  %519 = vmatpush.msra.mxu2 %v501_v17 }
  0xaa   :  { %396 = vmatpush.msra.mxu3 %v336_v23 }
  0xac   :  { %397 = vmatpush.msra.mxu3 %v335_v28 }
  0xae   :  { %398 = vmatpush.msra.mxu3 %v334_v32  ;;  %v498_v32 = vld [vmem:[%s1006_s6 + $0x8] sm:$0xff] }
  0xb0   :  { %399 = vmatpush.msra.mxu3 %v333_v36 }
  0xb2   :  { %400 = vmatpush.msra.mxu3 %v332_v40 }
  0xb4   :  { %401 = vmatpush.msra.mxu3 %v331_v43 }
  0xb6   :  { %402 = vmatpush.msra.mxu3 %v330_v46  ;;  %v554_v46 = vld [vmem:[%s1007_s7] sm:$0x1] }
  0xb8   :  { %403 = vmatpush.msra.mxu3 %v329_v49 }
  0xba   :  { %539 = vmatpush.msrb.mxu3 %v504_v14 }
  0xbc   :  { %540 = vmatpush.msrb.mxu3 %v503_v15 }
  0xbe   :  { %541 = vmatpush.msrb.mxu3 %v502_v16 }
  0xc0   :  { %542 = vmatpush.msrb.mxu3 %v501_v17 }
 0x124   :  { %v214_v12 = vpop.f32.mrf.mxu3 }
 0x125   :  { %618 = vmatmul.msk.f32.vlgmr.msrb.gmra.mxu0 %vm247_vm4, %v214_v12 }
 0x12c   :  { %v236_v13 = vpop.f32.mrf.mxu3 }
 0x12d   :  { %619 = vmatmul.msk.f32.vlgmr.msrb.gmra.mxu1 %vm247_vm4, %v236_v13 }
 0x1a2   :  { %v860_v18 = vpop.f32.mrf.mxu0 }
 0x1a3   :  { %v294_v25 = vmul.f32 %v860_v18, %v860_v18 }
 0x1aa   :  { %v291_v26 = vpop.f32.mrf.mxu1 }
 0x1ab   :  { %v295_v30 = vsub.f32 %v291_v26, %v294_v25 }
 0x1ad   :  { %v296_v34 = vmax.f32 %v295_v30, 0.0 }
 0x1af   :  { %v298_v38 = vadd.f32 1e-05, %v296_v34 }
 0x1b1   :  { %652 = vrsqrt.f32 %v298_v38  ;;  %vm305_vm9 = vweird.f32 %v298_v38 }
 0x1b7   :  { %v653_v51 = vpop.eup %652 }
 0x1b8   :  { %v300_v52 = vmul.f32 %v653_v51, %v298_v38  ;;  %vm306_vm8 = vweird.f32 %v653_v51 }
 0x1b9   :  { %vm307_vm10 = vmor %vm305_vm9, %vm306_vm8 }
 0x1ba   :  { %v301_v53 = vmul.f32 %v653_v51, %v300_v52 }
 0x1bc   :  { %v302_v54 = vmul.f32 0.5, %v301_v53 }
 0x1be   :  { %v303_v55 = vsub.f32 1.5, %v302_v54 }
 0x1c0   :  { %v304_v57 = vmul.f32 %v653_v51, %v303_v55 }
 0x1c2   :  { %v308_v58 = vsel %vm307_vm10, %v653_v51, %v304_v57 }
 0x1c3   :  { %v309_v59 = vmul.f32 %v308_v58, %v297_v56 }
 0x1c5   :  { %v311_v61 = vmul.f32 %v309_v59, %v860_v18  ;;  %v314_v62 = vperm.slane %v309_v59, 0  ;;  %v500_v18 = vld [vmem:[%s1006_s6 + $0x18] sm:$0xff] }
 0x1c6   :  { %520 = vmatpush.msra.mxu2 %v500_v18  ;;  %543 = vmatpush.msrb.mxu3 %v500_v18 }
 0x1c7   :  { %v312_v63 = vsub.f32 %v310_v60, %v311_v61  ;;  %v316_v0 = vmul.f32 %v314_v62, %v834_v7  ;;  %v317_v1 = vmul.f32 %v314_v62, %v832_v6 }
 0x1c8   :  { %521 = vmatpush.msra.mxu2 %v499_v31  ;;  %544 = vmatpush.msrb.mxu3 %v499_v31 }
 0x1c9   :  { %v319_v2 = vperm.slane %v312_v63, 0 }
 0x1ca   :  { %522 = vmatpush.msra.mxu2 %v498_v32  ;;  %545 = vmatpush.msrb.mxu3 %v498_v32 }
 0x1cb   :  { %v321_v3 = vadd.f32 %v319_v2, %v316_v0  ;;  %v322_v4 = vadd.f32 %v319_v2, %v317_v1 }
 0x1cc   :  { %523 = vmatpush.msra.mxu2 %v497_v33  ;;  %546 = vmatpush.msrb.mxu3 %v497_v33 }
 0x1cd   :  { %v323_v5 = vmax.f32 %v321_v3, 0.0  ;;  %v324_v8 = vmax.f32 %v322_v4, 0.0 }
 0x1cf   :  { %325 = vst.msk [vmem:[#allocation2 + $0x1] sm:$0xff] %vm247_vm4, %v323_v5 }
 0x1d0   :  { %326 = vst.msk [vmem:[#allocation2 + $0x11] sm:$0xff] %vm247_vm4, %v324_v8 }
 0x1d6   :  { %v339_v10 = vld [vmem:[#allocation2 + $0x1] sm:$0xff] }
 0x1d7   :  { %v327_v11 = vld [vmem:[#allocation2] sm:$0xff]  ;;  %630 = vmatmul.msk.f32.vlgmr.msrb.gmra.mxu2 %vm352_vm11, %v339_v10  ;;  %v340_v13 = vld [vmem:[#allocation2 + $0x11] sm:$0xff] }
 0x1d8   :  { %v411_v12 = vld [vmem:[#allocation2 + $0x2] sm:$0xff]  ;;  %632 = vmatmul.msk.f32.vlgmr.msra.gmra.mxu3 %vm352_vm11, %v327_v11  ;;  %v328_v7 = vld [vmem:[#allocation2 + $0x10] sm:$0xff] }
 0x1d9   :  { %644 = vmatmul.msk.f32.vlgmr.msra.gmra.mxu0 %vm352_vm11, %v411_v12  ;;  %v412_v6 = vld [vmem:[#allocation2 + $0x12] sm:$0xff] }
 0x1df   :  { %631 = vmatmul.msk.f32.gmra.mxu2 %vm352_vm11, %v340_v13 }
 0x1e0   :  { %633 = vmatmul.msk.f32.gmra.mxu3 %vm352_vm11, %v328_v7 }
 0x1e1   :  { %645 = vmatmul.msk.f32.gmra.mxu0 %vm352_vm11, %v412_v6 }
 0x256   :  { %v447_v19 = vpop.f32.mrf.mxu0 }
 0x25a   :  { %v376_v20 = vpop.f32.mrf.mxu2 }
 0x25b   :  { %v405_v21 = vpop.f32.mrf.mxu3 }
 0x25c   :  { %v406_v24 = vadd.f32 %v405_v21, %v376_v20 }
 0x25e   :  { %v450_v26 = vpop.f32.mrf.mxu0  ;;  %v453_v28 = vadd.f32 %v447_v19, %v406_v24 }
 0x260   :  { %v475_v30 = vmul.f32 %v453_v28, %v453_v28 }
 0x262   :  { %v379_v22 = vpop.f32.mrf.mxu2 }
 0x263   :  { %v408_v23 = vpop.f32.mrf.mxu3 }
 0x264   :  { %v409_v25 = vadd.f32 %v408_v23, %v379_v22 }
 0x266   :  { %v454_v27 = vadd.f32 %v450_v26, %v409_v25 }
 0x268   :  { %v476_v29 = vmul.f32 %v454_v27, %v454_v27  ;;  %469 = vmatpush.msra.mxu1 %v454_v27 }
 0x26a   :  { %470 = vmatpush.msra.mxu1 %v453_v28 }
 0x26b   :  { %646 = vmatmul.msk.f32.vlgmr.msra.gmra.mxu1 %vm193_vm3, %v656_v9 }
 0x26c   :  { %491 = vmatpush.msrb.mxu1 %v476_v29 }
 0x26e   :  { %492 = vmatpush.msrb.mxu1 %v475_v30 }
 0x273   :  { %647 = vmatmul.msk.f32.vlgmr.msrb.gmra.mxu1 %vm193_vm3, %v656_v9 }
 0x2e8   :  { %v472_v34 = vpop.f32.mrf.mxu1 }
 0x2e9   :  { %648 = vmatmul.msk.f32.vlgmr.msra.gmra.mxu2 %vm247_vm4, %v472_v34 }
 0x2f0   :  { %v494_v9 = vpop.f32.mrf.mxu1 }
 0x2f1   :  { %649 = vmatmul.msk.f32.vlgmr.msrb.gmra.mxu3 %vm247_vm4, %v494_v9 }
 0x36c   :  { %v525_v35 = vpop.f32.mrf.mxu2 }
 0x36d   :  { %v551_v36 = vmul.f32 %v525_v35, %v525_v35 }
 0x374   :  { %v548_v37 = vpop.f32.mrf.mxu3 }
 0x375   :  { %v552_v38 = vsub.f32 %v548_v37, %v551_v36 }
 0x377   :  { %v553_v39 = vmax.f32 %v552_v38, 0.0 }
 0x379   :  { %v555_v40 = vadd.f32 1e-05, %v553_v39 }
 0x37b   :  { %654 = vrsqrt.f32 %v555_v40  ;;  %vm562_vm13 = vweird.f32 %v555_v40 }
 0x381   :  { %v655_v41 = vpop.eup %654 }
 0x382   :  { %v557_v42 = vmul.f32 %v655_v41, %v555_v40  ;;  %vm563_vm12 = vweird.f32 %v655_v41 }
 0x383   :  { %vm564_vm14 = vmor %vm562_vm13, %vm563_vm12 }
 0x384   :  { %v558_v43 = vmul.f32 %v655_v41, %v557_v42 }
 0x386   :  { %v559_v44 = vmul.f32 0.5, %v558_v43 }
 0x388   :  { %v560_v45 = vsub.f32 1.5, %v559_v44 }
 0x38a   :  { %v561_v47 = vmul.f32 %v655_v41, %v560_v45 }
 0x38c   :  { %v565_v48 = vsel %vm564_vm14, %v655_v41, %v561_v47 }
 0x38d   :  { %v566_v49 = vmul.f32 %v565_v48, %v554_v46 }
 0x38f   :  { %v568_v51 = vmul.f32 %v566_v49, %v525_v35  ;;  %v571_v52 = vperm.slane %v566_v49, 0 }
 0x391   :  { %v569_v53 = vsub.f32 %v567_v50, %v568_v51  ;;  %v573_v54 = vmul.f32 %v571_v52, %v453_v28  ;;  %v574_v55 = vmul.f32 %v571_v52, %v454_v27 }
 0x393   :  { %v576_v56 = vperm.slane %v569_v53, 0 }
 0x395   :  { %v578_v57 = vadd.f32 %v576_v56, %v573_v54  ;;  %v579_v58 = vadd.f32 %v576_v56, %v574_v55 }
 0x397   :  { %v580_v59 = vmax.f32 %v578_v57, 0.0  ;;  %v581_v60 = vmax.f32 %v579_v58, 0.0 }
 0x399   :  { %582 = vst.msk [vmem:[%s1009_s9] sm:$0xff] %vm247_vm4, %v580_v59 }
 0x39a   :  { %583 = vst.msk [vmem:[%s1009_s9 + $0x8] sm:$0xff] %vm247_vm4, %v581_v60 }

</bundles_post_ra>
